<compile_context>
chip_gen: v7x
topology: tpu7x:2x2x1
jax: 0.10.0
libtpu: 0.0.40
codegen_flags: <defaults>
</compile_context>

<pallas_src>
import jax
import jax.numpy as jnp
from jax.experimental import pallas as pl
from jax.experimental.pallas import tpu as pltpu

_C1 = 0.01 ** 2
_C2 = 0.03 ** 2


def _ssim_kernel(img1_ref, img2_ref, blur_ref, out_ref):
    """One group of G image pairs per grid step.

    img1_ref / img2_ref : (G, H*W) blocks in native dtype
    blur_ref            : (H*W, H*W) bf16 Kronecker blur matrix (symmetric)
    out_ref             : (1, 1, 1) per-block partial sum of the SSIM map
    """
    p = img1_ref[...].astype(jnp.float32)          # (G, N)
    q = img2_ref[...].astype(jnp.float32)          # (G, N)
    g = p.shape[0]

    # Stack [p, q, p*p, q*q, p*q] so a single MXU matmul computes all five
    # Gaussian-blurred maps for the whole group (shared weights, big K/N).
    x = jnp.concatenate([p, q, p * p, q * q, p * q], axis=0)       # (5G, N) f32
    y = jnp.dot(x.astype(jnp.bfloat16), blur_ref[...],
                preferred_element_type=jnp.float32)                # (5G, N) f32

    mu1 = y[0 * g:1 * g]
    mu2 = y[1 * g:2 * g]
    e11 = y[2 * g:3 * g]
    e22 = y[3 * g:4 * g]
    e12 = y[4 * g:5 * g]

    mu1_sq = mu1 * mu1
    mu2_sq = mu2 * mu2
    mu1_mu2 = mu1 * mu2
    sigma1_sq = e11 - mu1_sq
    sigma2_sq = e22 - mu2_sq
    sigma12 = e12 - mu1_mu2

    num = (2.0 * mu1_mu2 + _C1) * (2.0 * sigma12 + _C2)
    den = (mu1_sq + mu2_sq + _C1) * (sigma1_sq + sigma2_sq + _C2)
    # Denominator is strictly positive (C1, C2 > 0); approx reciprocal -> EUP.
    ssim_map = num * pl.reciprocal(den, approx=True)

    out_ref[0] = jnp.sum(ssim_map, keepdims=True)   # (1, 1) into (1,1,1) block


def _gaussian_window_1d(window_size, sigma):
    x = jnp.arange(window_size, dtype=jnp.float32)
    center = window_size // 2
    g = jnp.exp(-((x - center) ** 2) / (2.0 * sigma ** 2))
    return g / jnp.sum(g)


def _blur_matrix_1d(size, window_size, sigma):
    """Zero-padded 1-D Gaussian cross-correlation as a (size, size) banded matrix.

    out[i] = sum_k g[k] * x[i + k - pad]  =>  A[i, h] = g[h - i + pad].
    Symmetric because the Gaussian window is symmetric.
    """
    g = _gaussian_window_1d(window_size, sigma)
    pad = window_size // 2
    i = jnp.arange(size)[:, None]
    h = jnp.arange(size)[None, :]
    k = h - i + pad
    valid = (k >= 0) & (k < window_size)
    return jnp.where(valid, g[jnp.clip(k, 0, window_size - 1)], 0.0)


def _pick_group(bc, n):
    """Images per grid step: as many as VMEM comfortably allows, dividing BC."""
    # ~16 live f32 copies of a (G, N) tile (inputs x2 buffers, stacked operand,
    # matmul result, epilogue temps) kept under ~24 MiB.
    cap = max(1, (24 * 1024 * 1024) // (16 * 4 * n))
    if bc <= cap:
        return bc
    divs = [d for d in range(1, bc + 1) if bc % d == 0 and d <= cap]
    mult8 = [d for d in divs if d % 8 == 0]
    return max(mult8) if mult8 else max(divs)


def ssim_loss(img1, img2, window_size=11, sigma=1.5):
    """Pallas implementation of SSIMLoss.forward (NCHW inputs, size_average=True)."""
    B, C, H, W = img1.shape
    bc = B * C
    n = H * W

    # TODO(synk): for large H*W (>~4096) the (H*W, H*W) Kronecker blur matrix is
    # impractical; switch to the separable A @ X @ B formulation tiled over W.
    a = _blur_matrix_1d(H, window_size, sigma)              # (H, H)
    b = _blur_matrix_1d(W, window_size, sigma)              # (W, W)
    blur = jnp.kron(a, b).astype(jnp.bfloat16)              # (H*W, H*W), symmetric

    # Native dtype into the kernel (cast to f32 happens after the DMA).
    p = img1.reshape(bc, n)
    q = img2.reshape(bc, n)

    g = _pick_group(bc, n)
    nb = bc // g

    block_sums = pl.pallas_call(
        _ssim_kernel,
        out_shape=jax.ShapeDtypeStruct((nb, 1, 1), jnp.float32),
        grid=(nb,),
        in_specs=[
            pl.BlockSpec((g, n), lambda i: (i, 0)),          # pred group
            pl.BlockSpec((g, n), lambda i: (i, 0)),          # target group
            pl.BlockSpec((n, n), lambda i: (0, 0)),          # constant blur matrix
        ],
        out_specs=pl.BlockSpec((1, 1, 1), lambda i: (i, 0, 0)),
        compiler_params=pltpu.CompilerParams(
            dimension_semantics=("parallel",),               # shard BC over TCs (v7x)
            vmem_limit_bytes=48 * 1024 * 1024),
    )(p, q, blur)

    return 1.0 - jnp.sum(block_sums) / jnp.float32(bc * n)


def _reference_ssim_loss(img1, img2, window_size=11, sigma=1.5):
    """Independent pure-JAX reference matching the PyTorch module (f32, HIGHEST)."""
    B, C, H, W = img1.shape
    g1d = _gaussian_window_1d(window_size, sigma)
    w2d = jnp.outer(g1d, g1d)
    kern = jnp.broadcast_to(w2d, (C, 1, window_size, window_size)).astype(jnp.float32)
    pad = window_size // 2

    def blur(x):
        return jax.lax.conv_general_dilated(
            x.astype(jnp.float32), kern, (1, 1),
            [(pad, pad), (pad, pad)],
            feature_group_count=C,
            dimension_numbers=("NCHW", "OIHW", "NCHW"),
            precision=jax.lax.Precision.HIGHEST)

    mu1, mu2 = blur(img1), blur(img2)
    mu1_sq, mu2_sq, mu1_mu2 = mu1 * mu1, mu2 * mu2, mu1 * mu2
    s1 = blur(img1 * img1) - mu1_sq
    s2 = blur(img2 * img2) - mu2_sq
    s12 = blur(img1 * img2) - mu1_mu2
    ssim_map = ((2 * mu1_mu2 + _C1) * (2 * s12 + _C2)) / (
        (mu1_sq + mu2_sq + _C1) * (s1 + s2 + _C2))
    return 1.0 - jnp.mean(ssim_map)


if __name__ == "__main__":
    key = jax.random.PRNGKey(0)
    k1, k2 = jax.random.split(key)
    B, C, H, W = 2, 4, 16, 16
    # SSIM expects inputs in [0, 1].
    img1 = jax.random.uniform(k1, (B, C, H, W), dtype=jnp.float32)
    img2 = jax.random.uniform(k2, (B, C, H, W), dtype=jnp.float32)

    loss = ssim_loss(img1, img2)
    jax.block_until_ready(loss)

    ref = _reference_ssim_loss(img1, img2)
    assert jnp.abs(loss - ref) < 1e-2, (float(loss), float(ref))

    print("KERNEL_OK")
</pallas_src>

<mosaic_0001>
module attributes {stable_mosaic.version = 11 : i64} {
  func.func @_ssim_kernel(%arg0: i32, %arg1: memref<8x256xf32, #tpu.memory_space<vmem>>, %arg2: memref<8x256xf32, #tpu.memory_space<vmem>>, %arg3: memref<256x256xbf16, #tpu.memory_space<vmem>>, %arg4: memref<1x1x1xf32, #tpu.memory_space<vmem>>) attributes {dimension_semantics = [#tpu.dimension_semantics<parallel>], iteration_bounds = array<i64: 1>, scalar_prefetch = 0 : i64, scratch_operands = 0 : i64, tpu.core_type = #tpu.core_type<tc>, window_params = [{transform_indices = @transform_0, window_bounds = array<i64: 8, 256>}, {transform_indices = @transform_1, window_bounds = array<i64: 8, 256>}, {pipeline_mode = #tpu.pipeline_mode<synchronous>, transform_indices = @transform_2, window_bounds = array<i64: 256, 256>}, {transform_indices = @transform_3, window_bounds = array<i64: 1, 1, 1>}]} {
    %c0 = arith.constant 0 : index
    %c0_0 = arith.constant 0 : index
    %0 = vector.load %arg1[%c0, %c0_0] : memref<8x256xf32, #tpu.memory_space<vmem>>, vector<8x256xf32>
    %c0_1 = arith.constant 0 : index
    %c0_2 = arith.constant 0 : index
    %1 = vector.load %arg2[%c0_1, %c0_2] : memref<8x256xf32, #tpu.memory_space<vmem>>, vector<8x256xf32>
    %2 = arith.mulf %0, %0 : vector<8x256xf32>
    %3 = arith.mulf %1, %1 : vector<8x256xf32>
    %4 = arith.mulf %0, %1 : vector<8x256xf32>
    %5 = tpu.concatenate %0, %1, %2, %3, %4 in 0 : vector<8x256xf32>, vector<8x256xf32>, vector<8x256xf32>, vector<8x256xf32>, vector<8x256xf32> -> vector<40x256xf32>
    %6 = arith.truncf %5 : vector<40x256xf32> to vector<40x256xbf16>
    %c0_3 = arith.constant 0 : index
    %c0_4 = arith.constant 0 : index
    %7 = vector.load %arg3[%c0_3, %c0_4] : memref<256x256xbf16, #tpu.memory_space<vmem>>, vector<256x256xbf16>
    %cst = arith.constant dense<0.000000e+00> : vector<40x256xf32>
    %8 = tpu.matmul %6, %7, %cst {dimension_numbers = #tpu.dot_dimension_numbers<[1], [0], [0], [1], [0, 0, 1, 1], [], []>} : vector<40x256xbf16>, vector<256x256xbf16>, vector<40x256xf32> -> vector<40x256xf32>
    %9 = vector.extract_strided_slice %8 {offsets = [0, 0], sizes = [8, 256], strides = [1, 1]} : vector<40x256xf32> to vector<8x256xf32>
    %10 = vector.extract_strided_slice %8 {offsets = [8, 0], sizes = [8, 256], strides = [1, 1]} : vector<40x256xf32> to vector<8x256xf32>
    %11 = vector.extract_strided_slice %8 {offsets = [16, 0], sizes = [8, 256], strides = [1, 1]} : vector<40x256xf32> to vector<8x256xf32>
    %12 = vector.extract_strided_slice %8 {offsets = [24, 0], sizes = [8, 256], strides = [1, 1]} : vector<40x256xf32> to vector<8x256xf32>
    %13 = vector.extract_strided_slice %8 {offsets = [32, 0], sizes = [8, 256], strides = [1, 1]} : vector<40x256xf32> to vector<8x256xf32>
    %14 = arith.mulf %9, %9 : vector<8x256xf32>
    %15 = arith.mulf %10, %10 : vector<8x256xf32>
    %16 = arith.mulf %9, %10 : vector<8x256xf32>
    %17 = arith.subf %11, %14 : vector<8x256xf32>
    %18 = arith.subf %12, %15 : vector<8x256xf32>
    %19 = arith.subf %13, %16 : vector<8x256xf32>
    %cst_5 = arith.constant 2.000000e+00 : f32
    %20 = vector.broadcast %cst_5 : f32 to vector<8x256xf32>
    %21 = arith.mulf %20, %16 : vector<8x256xf32>
    %cst_6 = arith.constant 9.99999974E-5 : f32
    %22 = vector.broadcast %cst_6 : f32 to vector<8x256xf32>
    %23 = arith.addf %21, %22 : vector<8x256xf32>
    %cst_7 = arith.constant 2.000000e+00 : f32
    %24 = vector.broadcast %cst_7 : f32 to vector<8x256xf32>
    %25 = arith.mulf %24, %19 : vector<8x256xf32>
    %cst_8 = arith.constant 8.99999984E-4 : f32
    %26 = vector.broadcast %cst_8 : f32 to vector<8x256xf32>
    %27 = arith.addf %25, %26 : vector<8x256xf32>
    %28 = arith.mulf %23, %27 : vector<8x256xf32>
    %29 = arith.addf %14, %15 : vector<8x256xf32>
    %cst_9 = arith.constant 9.99999974E-5 : f32
    %30 = vector.broadcast %cst_9 : f32 to vector<8x256xf32>
    %31 = arith.addf %29, %30 : vector<8x256xf32>
    %32 = arith.addf %17, %18 : vector<8x256xf32>
    %cst_10 = arith.constant 8.99999984E-4 : f32
    %33 = vector.broadcast %cst_10 : f32 to vector<8x256xf32>
    %34 = arith.addf %32, %33 : vector<8x256xf32>
    %35 = arith.mulf %31, %34 : vector<8x256xf32>
    %36 = tpu.reciprocal %35 {approx = true} : vector<8x256xf32> -> vector<8x256xf32>
    %37 = arith.mulf %28, %36 : vector<8x256xf32>
    %38 = vector.shape_cast %37 : vector<8x256xf32> to vector<1x8x256xf32>
    %cst_11 = arith.constant dense<0.000000e+00> : vector<1xf32>
    %39 = vector.multi_reduction <add>, %38, %cst_11 [1, 2] : vector<1x8x256xf32> to vector<1xf32>
    %40 = vector.shape_cast %39 : vector<1xf32> to vector<1x1x1xf32>
    %41 = vector.extract %40[0, 0, 0] : f32 from vector<1x1x1xf32>
    %42 = vector.broadcast %41 : f32 to vector<1x1xf32>
    %c0_12 = arith.constant 0 : index
    %c0_13 = arith.constant 0 : index
    %c0_14 = arith.constant 0 : index
    %43 = vector.load %arg4[%c0_12, %c0_13, %c0_14] : memref<1x1x1xf32, #tpu.memory_space<vmem>>, vector<1x1x1xf32>
    %44 = vector.shape_cast %43 : vector<1x1x1xf32> to vector<1x1xf32>
    %45 = vector.shape_cast %42 : vector<1x1xf32> to vector<1x1x1xf32>
    tpu.vector_store %arg4[%c0_12, %c0_13, %c0_14], %45 {strides = array<i32>} : memref<1x1x1xf32, #tpu.memory_space<vmem>>, vector<1x1x1xf32>,
    return
  }
  func.func @transform_0(%arg0: i32) -> (i32, i32) {
    %c0_i32 = arith.constant 0 : i32
    %c0_i32_0 = arith.constant 0 : i32
    return %arg0, %c0_i32 : i32, i32
  }
  func.func @transform_1(%arg0: i32) -> (i32, i32) {
    %c0_i32 = arith.constant 0 : i32
    %c0_i32_0 = arith.constant 0 : i32
    return %arg0, %c0_i32 : i32, i32
  }
  func.func @transform_2(%arg0: i32) -> (i32, i32) {
    %c0_i32 = arith.constant 0 : i32
    %c0_i32_0 = arith.constant 0 : i32
    %c0_i32_1 = arith.constant 0 : i32
    return %c0_i32, %c0_i32_0 : i32, i32
  }
  func.func @transform_3(%arg0: i32) -> (i32, i32, i32) {
    %c0_i32 = arith.constant 0 : i32
    %c0_i32_0 = arith.constant 0 : i32
    %c0_i32_1 = arith.constant 0 : i32
    return %arg0, %c0_i32, %c0_i32_0 : i32, i32, i32
  }
}

</mosaic_0001>

<bundles_post_ra>
// kernel: tpu_custom_call.1
= control target key start
LH: loop header
LB: loop body
LE: loop exit
PB: predicated region body
PF: predicated region fallthrough
CT: control target
= control target key end

     0   :  { %8 = vsyncpa [#allocation3], 0  ;;  %s690_s0 = inlined_call_operand.hbm [shape: f32[8,256], index: 0, kind: input, shape index: {}]   ;;  %s691_s1 = inlined_call_operand.hbm [shape: f32[8,256], index: 1, kind: input, shape index: {}]   ;;  %s692_s2 = inlined_call_operand.hbm [shape: bf16[256,256], index: 2, kind: input, shape index: {}]   ;;  %s693_s3 = inlined_call_operand.hbm [shape: f32[1,1,1], index: 3, kind: output, shape index: {}]  }
   0x1   :  { %9 = vsyncpa [#allocation6], 0 }
   0x2   :  { %10 = vsyncpa [#allocation4], 0  ;;  %s604_s12 = smov [#allocation5]   ;;  %s605_s14 = smov [#allocation2]  }
   0x3   :  { %s27_s13 = sshll.u32 %s604_s12, 4  ;;  %s17_s15 = sshll.u32 %s605_s14, 4  ;;  %s28_s13 = int_to_ptr.vmem [resolvable:$true] %s27_s13  ;;  %s18_s15 = int_to_ptr.vmem [resolvable:$true] %s17_s15 }
   0x4   :  { %s510_s18 = scalar_lea.hbm %s691_s1, 256 }
   0x5   :  { %p511_p0 = scmp.ne.s32.totalorder %s691_s1, %s510_s18  ;;  %p514_p1 = scmp.lt.u32.totalorder %s510_s18, %s691_s1 }
   0x7   :  { %p516_p2 = pnand %p514_p1, %p511_p0 }
   0x9   :  { %519 = shalt.err (!%p516_p2)
}
   0xa   :  { %s520_s23 = scalar_lea.vmem %s28_s13, 256  ;;  %p525_p4 = scmp.lt.s32.totalorder %s28_s13, %s28_s13 }
   0xb   :  { %p521_p3 = scmp.ne.s32.totalorder %s28_s13, %s520_s23  ;;  %p526_p5 = scmp.lt.s32.totalorder %s520_s23, %s520_s23 }
   0xd   :  { %p527_p6 = por %p526_p5, %p525_p4 }
   0xf   :  { %p528_p7 = pnand %p527_p6, %p521_p3 }
  0x11   :  { %531 = shalt.err (!%p528_p7)
}
  0x12   :  { %30 = dma.hbm_to_vmem [thread:$0]  %s691_s1, 256, %s28_s13, [#allocation6]  }
  0x13   :  { %s532_s28 = scalar_lea.hbm %s690_s0, 256 }
  0x14   :  { %p533_p8 = scmp.ne.s32.totalorder %s690_s0, %s532_s28  ;;  %p536_p9 = scmp.lt.u32.totalorder %s532_s28, %s690_s0 }
  0x16   :  { %p538_p10 = pnand %p536_p9, %p533_p8 }
  0x18   :  { %541 = shalt.err (!%p538_p10)
}
  0x19   :  { %s542_s6 = scalar_lea.vmem %s18_s15, 256  ;;  %p547_p12 = scmp.lt.s32.totalorder %s18_s15, %s18_s15 }
  0x1a   :  { %p543_p11 = scmp.ne.s32.totalorder %s18_s15, %s542_s6  ;;  %p548_p13 = scmp.lt.s32.totalorder %s542_s6, %s542_s6 }
  0x1c   :  { %p549_p0 = por %p548_p13, %p547_p12 }
  0x1e   :  { %p550_p1 = pnand %p549_p0, %p543_p11 }
  0x20   :  { %553 = shalt.err (!%p550_p1)
}
  0x21   :  { %20 = dma.hbm_to_vmem [thread:$0]  %s690_s0, 256, %s18_s15, [#allocation3]  }
  0x22   :  { %s606_s8 = smov [#allocation7]   ;;  %s554_s12 = scalar_lea.hbm %s692_s2, 4096 }
  0x23   :  { %s36_s9 = sshll.u32 %s606_s8, 4  ;;  %p555_p2 = scmp.ne.s32.totalorder %s692_s2, %s554_s12  ;;  %s37_s9 = int_to_ptr.vmem [resolvable:$true] %s36_s9 }
  0x24   :  { %p558_p3 = scmp.lt.u32.totalorder %s554_s12, %s692_s2 }
  0x26   :  { %p560_p4 = pnand %p558_p3, %p555_p2 }
  0x28   :  { %563 = shalt.err (!%p560_p4)
}
  0x29   :  { %s564_s18 = scalar_lea.vmem %s37_s9, 4096  ;;  %p569_p6 = scmp.lt.s32.totalorder %s37_s9, %s37_s9 }
  0x2a   :  { %p565_p5 = scmp.ne.s32.totalorder %s37_s9, %s564_s18  ;;  %p570_p7 = scmp.lt.s32.totalorder %s564_s18, %s564_s18 }
  0x2c   :  { %p571_p8 = por %p570_p7, %p569_p6 }
  0x2e   :  { %p572_p9 = pnand %p571_p8, %p565_p5 }
  0x30   :  { %575 = shalt.err (!%p572_p9)
}
  0x31   :  { %s607_s0 = smov 128   ;;  %s608_s15 = smov 8  }
  0x32   :  { %42 = dma.hbm_to_vmem [thread:$0]  %s692_s2, 4096, %s37_s9, [#allocation6], %s607_s0, %s607_s0, %s608_s15  }
  0x33   :  { %598 = dma.done.wait [#allocation3], 256  }
  0x34   :  { %599 = vsyncadd [#allocation3], 4294967040 }
  0x35   :  { %600 = dma.done.wait [#allocation6], 4352  }
  0x36   :  { %601 = vsyncadd [#allocation6], 4294962944  ;;  %v458_v0 = vld [vmem:[#allocation7 + $0x4] ss:$8 sps:$4 sm:$0xff]   ;;  %v460_v1 = vld [vmem:[#allocation7] ss:$8 sps:$4 sm:$0xff]  }
  0x37   :  { %260 = vmatprep.subr.bf16.mxu0 %v458_v0  ;;  %418 = vmatprep.subr.bf16.mxu1 %v458_v0  ;;  %v461_v2 = vld [vmem:[#allocation7 + $0x14] ss:$8 sps:$4 sm:$0xff]   ;;  %v463_v3 = vld [vmem:[#allocation7 + $0x10] ss:$8 sps:$4 sm:$0xff]   ;;  %v464_v4 = vld [vmem:[#allocation7 + $0x24] ss:$8 sps:$4 sm:$0xff]  }
  0x38   :  { %261 = vmatpush1.bf16.msra.mxu0 %v460_v1  ;;  %434 = vmatpush1.bf16.msra.mxu1 %v460_v1  ;;  %v466_v5 = vld [vmem:[#allocation7 + $0x20] ss:$8 sps:$4 sm:$0xff]   ;;  %v467_v6 = vld [vmem:[#allocation7 + $0x34] ss:$8 sps:$4 sm:$0xff]   ;;  %v469_v7 = vld [vmem:[#allocation7 + $0x30] ss:$8 sps:$4 sm:$0xff]  }
  0x39   :  { %262 = vmatprep.subr.bf16.mxu0 %v461_v2  ;;  %419 = vmatprep.subr.bf16.mxu1 %v461_v2  ;;  %v470_v8 = vld [vmem:[#allocation7 + $0x44] ss:$8 sps:$4 sm:$0xff]   ;;  %v472_v9 = vld [vmem:[#allocation7 + $0x40] ss:$8 sps:$4 sm:$0xff]   ;;  %v473_v10 = vld [vmem:[#allocation7 + $0x54] ss:$8 sps:$4 sm:$0xff]  }
  0x3a   :  { %v475_v11 = vld [vmem:[#allocation7 + $0x50] ss:$8 sps:$4 sm:$0xff]   ;;  %v476_v12 = vld [vmem:[#allocation7 + $0x64] ss:$8 sps:$4 sm:$0xff]   ;;  %v478_v18 = vld [vmem:[#allocation7 + $0x60] ss:$8 sps:$4 sm:$0xff]  }
  0x3b   :  { %v666_v13 = vld [vmem:[#allocation2 + $0x8] sm:$0xff]  ;;  %v668_v14 = vld [vmem:[#allocation5 + $0x8] sm:$0xff]  ;;  %v52_v36 = vld [vmem:[#allocation2] sm:$0xff]  ;;  %s609_s2 = smov [#allocation8]   ;;  %vm368_vm0 = vcmask 0  }
  0x3c   :  { %263 = vmatpush1.bf16.msra.mxu0 %v463_v3  ;;  %435 = vmatpush1.bf16.msra.mxu1 %v463_v3  ;;  %v63_v15 = vpack.c.bf16 %v668_v14, %v666_v13  ;;  %v57_v16 = vmul.f32 %v666_v13, %v666_v13  ;;  %v59_v17 = vmul.f32 %v668_v14, %v668_v14  ;;  %v479_v19 = vld [vmem:[#allocation7 + $0x74] ss:$8 sps:$4 sm:$0xff]   ;;  %v481_v21 = vld [vmem:[#allocation7 + $0x70] ss:$8 sps:$4 sm:$0xff]   ;;  %v482_v22 = vld [vmem:[#allocation7 + $0x84] ss:$8 sps:$4 sm:$0xff]  }
  0x3d   :  { %264 = vmatprep.subr.bf16.mxu0 %v464_v4  ;;  %420 = vmatprep.subr.bf16.mxu1 %v464_v4  ;;  %v484_v23 = vld [vmem:[#allocation7 + $0x80] ss:$8 sps:$4 sm:$0xff]   ;;  %v485_v24 = vld [vmem:[#allocation7 + $0x94] ss:$8 sps:$4 sm:$0xff]   ;;  %v487_v25 = vld [vmem:[#allocation7 + $0x90] ss:$8 sps:$4 sm:$0xff]   ;;  %v56_v39 = vmul.f32 %v52_v36, %v52_v36  ;;  %v61_v42 = vmul.f32 %v668_v14, %v666_v13 }
  0x3e   :  { %v65_v20 = vpack.c.bf16 %v59_v17, %v57_v16  ;;  %292 = vmatprep.mubr.bf16.mxu0 %v63_v15  ;;  %v488_v26 = vld [vmem:[#allocation7 + $0xa4] ss:$8 sps:$4 sm:$0xff]   ;;  %v490_v27 = vld [vmem:[#allocation7 + $0xa0] ss:$8 sps:$4 sm:$0xff]   ;;  %v491_v28 = vld [vmem:[#allocation7 + $0xb4] ss:$8 sps:$4 sm:$0xff]  }
  0x3f   :  { %v493_v29 = vld [vmem:[#allocation7 + $0xb0] ss:$8 sps:$4 sm:$0xff]   ;;  %v494_v30 = vld [vmem:[#allocation7 + $0xc4] ss:$8 sps:$4 sm:$0xff]   ;;  %v496_v31 = vld [vmem:[#allocation7 + $0xc0] ss:$8 sps:$4 sm:$0xff]   ;;  %v67_v45 = vpack.c.bf16 %v61_v42, %v61_v42 }
  0x40   :  { %265 = vmatpush1.bf16.msra.mxu0 %v466_v5  ;;  %436 = vmatpush1.bf16.msra.mxu1 %v466_v5  ;;  %v497_v32 = vld [vmem:[#allocation7 + $0xd4] ss:$8 sps:$4 sm:$0xff]   ;;  %v499_v33 = vld [vmem:[#allocation7 + $0xd0] ss:$8 sps:$4 sm:$0xff]   ;;  %v500_v34 = vld [vmem:[#allocation7 + $0xe4] ss:$8 sps:$4 sm:$0xff]  }
  0x41   :  { %266 = vmatprep.subr.bf16.mxu0 %v467_v6  ;;  %421 = vmatprep.subr.bf16.mxu1 %v467_v6  ;;  %v502_v35 = vld [vmem:[#allocation7 + $0xe0] ss:$8 sps:$4 sm:$0xff]   ;;  %v54_v37 = vld [vmem:[#allocation5] sm:$0xff]  ;;  %s376_s21 = sshll.u32 %s609_s2, 4  ;;  %s377_s21 = int_to_ptr.vmem [resolvable:$true] %s376_s21 }
  0x42   :  { %302 = vmatprep.mubr.bf16.mxu1 %v65_v20  ;;  %v503_v38 = vld [vmem:[#allocation7 + $0xf4] ss:$8 sps:$4 sm:$0xff]   ;;  %v58_v40 = vmul.f32 %v54_v37, %v54_v37  ;;  %v505_v41 = vld [vmem:[#allocation7 + $0xf0] ss:$8 sps:$4 sm:$0xff]   ;;  %v62_v43 = vpack.c.bf16 %v54_v37, %v52_v36  ;;  %v60_v46 = vmul.f32 %v54_v37, %v52_v36  ;;  %s576_s23 = scalar_lea.vmem %s377_s21, 16  ;;  %s580_s24 = scalar_lea.vmem %s377_s21, 32 }
  0x43   :  { %p577_p10 = scmp.ne.s32.totalorder %s377_s21, %s576_s23  ;;  %p581_p11 = scmp.lt.s32.totalorder %s377_s21, %s377_s21 }
  0x44   :  { %267 = vmatpush1.bf16.msra.mxu0 %v469_v7  ;;  %437 = vmatpush1.bf16.msra.mxu1 %v469_v7  ;;  %v64_v44 = vpack.c.bf16 %v58_v40, %v56_v39  ;;  %v66_v47 = vpack.c.bf16 %v60_v46, %v60_v46  ;;  %p582_p12 = scmp.lt.s32.totalorder %s580_s24, %s576_s23 }
  0x45   :  { %268 = vmatprep.subr.bf16.mxu0 %v470_v8  ;;  %422 = vmatprep.subr.bf16.mxu1 %v470_v8 }
  0x46   :  { %p583_p13 = por %p582_p12, %p581_p11 }
  0x48   :  { %269 = vmatpush1.bf16.msra.mxu0 %v472_v9  ;;  %438 = vmatpush1.bf16.msra.mxu1 %v472_v9  ;;  %p584_p0 = pnand %p583_p13, %p577_p10 }
  0x49   :  { %270 = vmatprep.subr.bf16.mxu0 %v473_v10  ;;  %423 = vmatprep.subr.bf16.mxu1 %v473_v10 }
  0x4c   :  { %271 = vmatpush1.bf16.msra.mxu0 %v475_v11  ;;  %439 = vmatpush1.bf16.msra.mxu1 %v475_v11 }
  0x4d   :  { %272 = vmatprep.subr.bf16.mxu0 %v476_v12  ;;  %424 = vmatprep.subr.bf16.mxu1 %v476_v12 }
  0x50   :  { %273 = vmatpush1.bf16.msra.mxu0 %v478_v18  ;;  %440 = vmatpush1.bf16.msra.mxu1 %v478_v18 }
  0x51   :  { %274 = vmatprep.subr.bf16.mxu0 %v479_v19  ;;  %425 = vmatprep.subr.bf16.mxu1 %v479_v19 }
  0x54   :  { %275 = vmatpush1.bf16.msra.mxu0 %v481_v21  ;;  %441 = vmatpush1.bf16.msra.mxu1 %v481_v21 }
  0x55   :  { %276 = vmatprep.subr.bf16.mxu0 %v482_v22  ;;  %426 = vmatprep.subr.bf16.mxu1 %v482_v22 }
  0x58   :  { %277 = vmatpush1.bf16.msra.mxu0 %v484_v23  ;;  %442 = vmatpush1.bf16.msra.mxu1 %v484_v23 }
  0x59   :  { %278 = vmatprep.subr.bf16.mxu0 %v485_v24  ;;  %427 = vmatprep.subr.bf16.mxu1 %v485_v24 }
  0x5c   :  { %279 = vmatpush1.bf16.msra.mxu0 %v487_v25  ;;  %443 = vmatpush1.bf16.msra.mxu1 %v487_v25 }
  0x5d   :  { %280 = vmatprep.subr.bf16.mxu0 %v488_v26  ;;  %428 = vmatprep.subr.bf16.mxu1 %v488_v26 }
  0x60   :  { %281 = vmatpush1.bf16.msra.mxu0 %v490_v27  ;;  %444 = vmatpush1.bf16.msra.mxu1 %v490_v27 }
  0x61   :  { %282 = vmatprep.subr.bf16.mxu0 %v491_v28  ;;  %429 = vmatprep.subr.bf16.mxu1 %v491_v28 }
  0x64   :  { %283 = vmatpush1.bf16.msra.mxu0 %v493_v29  ;;  %445 = vmatpush1.bf16.msra.mxu1 %v493_v29 }
  0x65   :  { %284 = vmatprep.subr.bf16.mxu0 %v494_v30  ;;  %430 = vmatprep.subr.bf16.mxu1 %v494_v30 }
  0x68   :  { %285 = vmatpush1.bf16.msra.mxu0 %v496_v31  ;;  %446 = vmatpush1.bf16.msra.mxu1 %v496_v31 }
  0x69   :  { %286 = vmatprep.subr.bf16.mxu0 %v497_v32  ;;  %431 = vmatprep.subr.bf16.mxu1 %v497_v32 }
  0x6c   :  { %287 = vmatpush1.bf16.msra.mxu0 %v499_v33  ;;  %447 = vmatpush1.bf16.msra.mxu1 %v499_v33 }
  0x6d   :  { %288 = vmatprep.subr.bf16.mxu0 %v500_v34  ;;  %432 = vmatprep.subr.bf16.mxu1 %v500_v34 }
  0x70   :  { %289 = vmatpush1.bf16.msra.mxu0 %v502_v35  ;;  %448 = vmatpush1.bf16.msra.mxu1 %v502_v35 }
  0x71   :  { %290 = vmatprep.subr.bf16.mxu0 %v503_v38  ;;  %433 = vmatprep.subr.bf16.mxu1 %v503_v38 }
  0x74   :  { %291 = vmatpush1.bf16.msra.mxu0 %v505_v41  ;;  %449 = vmatpush1.bf16.msra.mxu1 %v505_v41 }
  0x77   :  { %293 = vmatmul.mubr.bf16.vlgmr.msra.gmra.mrb[0].mxu0 %v62_v43  ;;  %303 = vmatmul.mubr.bf16.vlgmr.msra.gmra.mrb[0].mxu1 %v64_v44 }
  0x78   :  { %312 = vmatprep.mubr.bf16.mxu1 %v67_v45 }
  0x7f   :  { %313 = vmatmul.mubr.bf16.gmra.mrb[4].mxu1 %v66_v47 }
 0x14a   :  { %v294_v48 = vpop.f32.mrb[0].mxu0  ;;  %v304_v49 = vpop.f32.mrb[0].mxu1 }
 0x14b   :  { %v321_v50 = vmul.f32 %v294_v48, %v294_v48  ;;  %v296_v51 = vpop.f32.mrb[1].mxu0  ;;  %v306_v52 = vpop.f32.mrb[1].mxu1 }
 0x14c   :  { %v322_v53 = vmul.f32 %v296_v51, %v296_v51  ;;  %v298_v54 = vpop.f32.mrb[2].mxu0  ;;  %v308_v55 = vpop.f32.mrb[2].mxu1 }
 0x14d   :  { %v327_v56 = vsub.f32 %v304_v49, %v321_v50  ;;  %v323_v57 = vmul.f32 %v298_v54, %v298_v54  ;;  %v325_v58 = vmul.f32 %v298_v54, %v294_v48  ;;  %v300_v59 = vpop.f32.mrb[3].mxu0  ;;  %v310_v60 = vpop.f32.mrb[3].mxu1 }
 0x14e   :  { %v328_v61 = vsub.f32 %v306_v52, %v322_v53  ;;  %v324_v62 = vmul.f32 %v300_v59, %v300_v59  ;;  %v326_v63 = vmul.f32 %v300_v59, %v296_v51 }
 0x14f   :  { %v343_v0 = vadd.f32 %v323_v57, %v321_v50  ;;  %v329_v1 = vsub.f32 %v308_v55, %v323_v57  ;;  %v333_v7 = vmul.f32 2.0, %v325_v58 }
 0x150   :  { %v344_v2 = vadd.f32 %v324_v62, %v322_v53  ;;  %v330_v3 = vsub.f32 %v310_v60, %v324_v62  ;;  %v334_v12 = vmul.f32 2.0, %v326_v63 }
 0x151   :  { %v347_v4 = vadd.f32 %v329_v1, %v327_v56  ;;  %v345_v8 = vadd.f32 0.0001, %v343_v0  ;;  %v335_v22 = vadd.f32 0.0001, %v333_v7 }
 0x152   :  { %v348_v5 = vadd.f32 %v330_v3, %v328_v61  ;;  %v314_v6 = vpop.f32.mrb[4].mxu1  ;;  %v346_v13 = vadd.f32 0.0001, %v344_v2  ;;  %v336_v24 = vadd.f32 0.0001, %v334_v12 }
 0x153   :  { %v349_v9 = vadd.f32 0.0009, %v347_v4  ;;  %v331_v10 = vsub.f32 %v314_v6, %v325_v58  ;;  %v316_v11 = vpop.f32.mrb[5].mxu1 }
 0x154   :  { %v350_v14 = vadd.f32 0.0009, %v348_v5  ;;  %v332_v15 = vsub.f32 %v316_v11, %v326_v63  ;;  %v318_v16 = vpop.f32.mrb[6].mxu1 }
 0x155   :  { %v351_v17 = vmul.f32 %v349_v9, %v345_v8  ;;  %v337_v18 = vmul.f32 2.0, %v331_v10  ;;  %v319_v19 = vpop.f32.mrb[7].mxu1 }
 0x156   :  { %v352_v20 = vmul.f32 %v350_v14, %v346_v13  ;;  %v338_v21 = vmul.f32 2.0, %v332_v15 }
 0x157   :  { %506 = vrcp.f32 %v351_v17  ;;  %v339_v23 = vadd.f32 0.0009, %v337_v18 }
 0x158   :  { %508 = vrcp.f32 %v352_v20  ;;  %v340_v25 = vadd.f32 0.0009, %v338_v21 }
 0x159   :  { %v341_v26 = vmul.f32 %v339_v23, %v335_v22 }
 0x15a   :  { %v342_v27 = vmul.f32 %v340_v25, %v336_v24 }
 0x161   :  { %v507_v28 = vpop.eup %506 }
 0x162   :  { %v509_v29 = vpop.eup %508  ;;  %v355_v30 = vmul.f32 %v507_v28, %v341_v26 }
 0x163   :  { %v356_v31 = vmul.f32 %v509_v29, %v342_v27 }
 0x165   :  { %v357_v32 = vadd.f32 %v356_v31, %v355_v30 }
 0x167   :  { %358 = vadd.xlane.f32.xlu0 %v357_v32 }
 0x1f4   :  { %v359_v33 = vpop.xlane.xlu0 %358 }
 0x1f5   :  { %v360_v34 = vrot.slane %v359_v33, 4 }
 0x1f7   :  { %v361_v35 = vadd.f32 %v360_v34, %v359_v33 }
 0x1f9   :  { %v362_v36 = vrot.slane %v361_v35, 2 }
 0x1fb   :  { %v363_v37 = vadd.f32 %v362_v36, %v361_v35 }
 0x1fd   :  { %v364_v38 = vrot.slane %v363_v37, 1 }
 0x1ff   :  { %v365_v39 = vadd.f32 %v364_v38, %v363_v37 }
 0x201   :  { %450 = vpush %v365_v39 }
 0x232   :  { %s451_s22 = spop %450 }
 0x233   :  { %v367_v40 = vstv %s451_s22 }
 0x234   :  { %369 = vst.msk [vmem:[#allocation8] sm:$0x1] %vm368_vm0, %v367_v40 }
 0x235   :  { %587 = shalt.err (!%p584_p0)
}
 0x236   :  { %s588_s27 = scalar_lea.hbm %s693_s3, 16 }
 0x237   :  { %p589_p1 = scmp.ne.s32.totalorder %s693_s3, %s588_s27  ;;  %p592_p2 = scmp.lt.u32.totalorder %s588_s27, %s693_s3 }
 0x239   :  { %p594_p3 = pnand %p592_p2, %p589_p1 }
 0x23b   :  { %597 = shalt.err (!%p594_p3)
}
 0x23c   :  { %379 = dma.vmem_to_hbm [thread:$0]  %s377_s21, 16, %s693_s3, [#allocation4]  }
 0x23d   :  { %602 = dma.done.wait [#allocation4], 16  }
 0x23e   :  { %603 = vsyncadd [#allocation4], 4294967280 }
 0x23f   :  { %383 = vsyncpa [#allocation3], 1 }
 0x240   :  { %384 = vsyncpa [#allocation6], 1 }
 0x241   :  { %385 = vsyncpa [#allocation4], 1 }

</bundles_post_ra>
